<compile_context>
chip_gen: v6e
topology: v6e:2x2x1
jax: 0.10.0
libtpu: 0.0.40
codegen_flags: <defaults>
</compile_context>

<pallas_src>
import functools
import math

import jax
import jax.numpy as jnp
from jax.experimental import pallas as pl
from jax.experimental.pallas import tpu as pltpu


# ----------------------------------------------------------------------------
# helpers
# ----------------------------------------------------------------------------
def _round_up(n, m):
    return ((n + m - 1) // m) * m


def _pick_tile(n, target, *, min_tiles=1):
    """Largest power-of-two tile dividing `n`, capped at `target` and (when the array
    is big enough) at n // min_tiles so the 'parallel' row axis always has at least
    `min_tiles` grid steps (keeps both v7x TensorCores busy)."""
    cap = min(target, n)
    if min_tiles > 1 and n // min_tiles >= 128:
        cap = min(cap, n // min_tiles)
    t = 1
    while t * 2 <= cap and n % (t * 2) == 0:
        t *= 2
    return t


# ----------------------------------------------------------------------------
# Pallas kernels
# ----------------------------------------------------------------------------
def _linear_kernel(x_ref, w_ref, b_ref, o_ref, *, activation):
    """y = x @ W + b, optionally followed by relu (row-tiled)."""
    y = jnp.dot(x_ref[...], w_ref[...], preferred_element_type=jnp.float32)
    y = y + b_ref[...]
    if activation == "relu":
        y = jnp.maximum(y, 0.0)
    o_ref[...] = y.astype(o_ref.dtype)


def linear(x, w, b, activation=None, *, tm_target=512):
    N, F_in = x.shape
    F_out = w.shape[1]
    tm = _pick_tile(N, tm_target, min_tiles=2)
    return pl.pallas_call(
        functools.partial(_linear_kernel, activation=activation),
        out_shape=jax.ShapeDtypeStruct((N, F_out), jnp.float32),
        grid=(N // tm,),
        in_specs=[
            pl.BlockSpec((tm, F_in), lambda i: (i, 0)),
            # whole weight / bias resident in VMEM, single copy (constant index)
            pl.BlockSpec(memory_space=pltpu.MemorySpace.VMEM),
            pl.BlockSpec(memory_space=pltpu.MemorySpace.VMEM),
        ],
        out_specs=pl.BlockSpec((tm, F_out), lambda i: (i, 0)),
        compiler_params=pltpu.CompilerParams(dimension_semantics=("parallel",)),
    )(x, w, b.reshape(1, F_out))


def _glind_conv_kernel(a_ref, zc_ref, zr_ref, wt_ref, wb_ref, cw_ref, cb_ref,
                       o_ref, zi_acc, *, K, H):
    """Fused GLIND layer (gcn backbone) + context softmax + residual + outer ReLU.

    Per row tile i, reduction over column tiles k (grid axis 1, last):
      zi      = sum_k A[i,k] @ z[k]                  (gcn_conv aggregation, f32 acc)
    at the last k step:
      h       = softmax(z[i] @ ctx_w + ctx_b)        (context_enc, context_type='node')
      proj    = zi @ W_top + z[i] @ W_bot            == [zi, z] @ W_all  -> (tm, K*H)
      out     = z[i] + sum_k h[:,k] * proj[:, k*H:(k+1)*H]   (mixture + residual)
      o_ref   = relu(out)                            (act_fn applied in GLIND.forward)
    """
    kk = pl.program_id(1)

    @pl.when(kk == 0)
    def _():
        zi_acc[...] = jnp.zeros_like(zi_acc)

    # bf16 x bf16 MXU matmul, f32 accumulation (zc pre-cast to bf16 in glue).
    zi_acc[...] += jnp.dot(a_ref[...], zc_ref[...],
                           preferred_element_type=jnp.float32)

    @pl.when(kk == pl.num_programs(1) - 1)
    def _():
        zr = zr_ref[...]          # (tm, H) f32 — residual / context input
        zi = zi_acc[...]          # (tm, H) f32 — aggregated neighbors

        # Fused context encoder: h = softmax(zr @ ctx_w + ctx_b), K lanes.
        logits = jnp.dot(zr, cw_ref[...], preferred_element_type=jnp.float32)
        logits = logits + cb_ref[...]
        logits = logits - jnp.max(logits, axis=-1, keepdims=True)
        e = jnp.exp(logits)
        h = e * pl.reciprocal(jnp.sum(e, axis=-1, keepdims=True), approx=True)

        # Single lane-dense projection (K*H output lanes) instead of K tiny matmuls;
        # splitting W avoids materializing the [zi, z] concat.
        proj = jnp.dot(zi.astype(jnp.bfloat16), wt_ref[...],
                       preferred_element_type=jnp.float32)
        proj = proj + jnp.dot(zr.astype(jnp.bfloat16), wb_ref[...],
                              preferred_element_type=jnp.float32)

        # Mixture over K experts; accumulator initialized with the residual.
        # H is padded to a multiple of 128, so every slice is full-vreg lane-dense.
        acc = zr
        for k in range(K):  # K is small and static
            acc = acc + h[:, k:k + 1] * proj[:, k * H:(k + 1) * H]
        o_ref[...] = jnp.maximum(acc, 0.0).astype(o_ref.dtype)


def glind_conv(a_norm_bf16, z, ctx_w, ctx_b, weights, *,
               tm_target=1024, tk_target=2048):
    """z: (Np, Hp) f32 (padded); weights: (K, 2H, H) raw; ctx_w: (H, K) raw."""
    Np, Hp = z.shape
    K, two_h, H = weights.shape
    assert two_h == 2 * H and H <= Hp

    tm = _pick_tile(Np, tm_target, min_tiles=2)   # >=2 row tiles (v7x megacore)
    tk = _pick_tile(Np, tk_target)                # big A tiles: >= MBs per grid step

    # (K, 2H, H) -> two lane-dense (Hp, K*Hp) halves (zi-half / z-half), bf16 for MXU.
    pad_hw = ((0, 0), (0, Hp - H), (0, Hp - H))
    w_top = jnp.pad(weights[:, :H, :], pad_hw)     # (K, Hp, Hp) — multiplies zi
    w_bot = jnp.pad(weights[:, H:, :], pad_hw)     # (K, Hp, Hp) — multiplies z
    w_top = jnp.transpose(w_top, (1, 0, 2)).reshape(Hp, K * Hp).astype(jnp.bfloat16)
    w_bot = jnp.transpose(w_bot, (1, 0, 2)).reshape(Hp, K * Hp).astype(jnp.bfloat16)

    cw = jnp.pad(ctx_w, ((0, Hp - ctx_w.shape[0]), (0, 0)))    # (Hp, K)
    cb = ctx_b.reshape(1, K)

    # Pre-cast the re-streamed column stream to bf16 in glue; zr stays f32.
    zc = z.astype(jnp.bfloat16)

    n_row_tiles = Np // tm
    cost = pl.CostEstimate(
        flops=2 * Np * Np * Hp + 4 * Np * K * Hp * Hp + 2 * Np * Hp * K,
        transcendentals=Np * K,
        bytes_accessed=(Np * Np * 2)                  # A (bf16), read once
        + n_row_tiles * Np * Hp * 2                   # z columns re-streamed per row tile
        + Np * Hp * 4                                 # z rows (f32)
        + Np * Hp * 4                                 # output writeback
        + 2 * Hp * K * Hp * 2                         # W_top + W_bot (bf16)
        + Hp * K * 4 + K * 4,                         # ctx_w, ctx_b
    )

    # Explicit VMEM budget for the tile plan (floor 32 MiB; cap below v7x's 64 MiB).
    vmem_bytes = (
        2 * tm * tk * 2            # A tiles, double-buffered bf16
        + 2 * tk * Hp * 2          # z column tiles, double-buffered bf16
        + 2 * tm * Hp * 4          # z row tiles, double-buffered f32
        + 2 * tm * Hp * 4          # output tiles, double-buffered f32
        + tm * Hp * 4              # zi accumulator scratch
        + 2 * Hp * K * Hp * 2      # W_top + W_bot, single copy each
        + Hp * K * 4 + 128 * 4     # ctx_w, ctx_b
    )
    vmem_limit = int(min(56 * 1024 * 1024, max(32 * 1024 * 1024, 1.5 * vmem_bytes)))

    # TODO(synk): sweep pipeline buffer depth on the A stream and a generation-gated
    # low-precision A (int8 on v5e/v6e, fp8-e4m3 on v7x) once accuracy is validated.
    return pl.pallas_call(
        functools.partial(_glind_conv_kernel, K=K, H=Hp),
        out_shape=jax.ShapeDtypeStruct((Np, Hp), jnp.float32),
        grid=(Np // tm, Np // tk),                                 # reduction axis last
        in_specs=[
            pl.BlockSpec((tm, tk), lambda i, k: (i, k)),           # A_norm tile (bf16)
            pl.BlockSpec((tk, Hp), lambda i, k: (k, 0)),           # z column block (bf16)
            pl.BlockSpec((tm, Hp), lambda i, k: (i, 0)),           # z row block (f32)
            pl.BlockSpec(memory_space=pltpu.MemorySpace.VMEM),     # W_top (single copy)
            pl.BlockSpec(memory_space=pltpu.MemorySpace.VMEM),     # W_bot (single copy)
            pl.BlockSpec(memory_space=pltpu.MemorySpace.VMEM),     # ctx_w
            pl.BlockSpec(memory_space=pltpu.MemorySpace.VMEM),     # ctx_b
        ],
        out_specs=pl.BlockSpec((tm, Hp), lambda i, k: (i, 0)),
        scratch_shapes=[pltpu.VMEM((tm, Hp), jnp.float32)],        # zi accumulator
        compiler_params=pltpu.CompilerParams(
            dimension_semantics=("parallel", "arbitrary"),
            vmem_limit_bytes=vmem_limit),
        cost_estimate=cost,
    )(a_norm_bf16, zc, z, w_top, w_bot, cw, cb)


# ----------------------------------------------------------------------------
# JAX glue
# ----------------------------------------------------------------------------
def build_gcn_adj(edge_index, n_nodes, n_pad):
    """Dense version of gcn_conv's SparseTensor(row=col, col=row, value=...), bf16,
    zero-padded to (n_pad, n_pad)."""
    row, col = edge_index[0], edge_index[1]
    deg = jnp.zeros((n_nodes,), jnp.float32).at[col].add(1.0)   # degree(col, N)
    d_norm_in = jnp.sqrt(1.0 / deg[col])
    d_norm_out = jnp.sqrt(1.0 / deg[row])
    val = d_norm_in * d_norm_out
    val = jnp.nan_to_num(val, nan=0.0, posinf=0.0, neginf=0.0)
    a = jnp.zeros((n_pad, n_pad), jnp.float32).at[col, row].add(val)
    return a.astype(jnp.bfloat16)
    # TODO(synk): for large sparse graphs, replace the dense N x N adjacency with a
    # blocked-sparse layout + PrefetchScalarGridSpec skipping empty column tiles.


def init_params(key, d_in, hidden, n_classes, K, num_layers):
    params = {}
    keys = jax.random.split(key, 4 + 3 * num_layers)
    ki = iter(keys)

    def uni(k, shape, stdv):
        return jax.random.uniform(k, shape, jnp.float32, -stdv, stdv)

    # fcs[0]: Linear(d_in, hidden); fcs[1]: Linear(hidden, n_classes)
    params["fc0_w"] = uni(next(ki), (d_in, hidden), 1.0 / math.sqrt(d_in))
    params["fc0_b"] = uni(next(ki), (hidden,), 1.0 / math.sqrt(d_in))
    params["fc1_w"] = uni(next(ki), (hidden, n_classes), 1.0 / math.sqrt(hidden))
    params["fc1_b"] = uni(next(ki), (n_classes,), 1.0 / math.sqrt(hidden))
    for i in range(num_layers):
        # context_enc[i]: Linear(hidden, K)  (context_type == 'node')
        params[f"ctx{i}_w"] = uni(next(ki), (hidden, K), 1.0 / math.sqrt(hidden))
        params[f"ctx{i}_b"] = uni(next(ki), (K,), 1.0 / math.sqrt(hidden))
        # convs[i].weights: Parameter(K, 2*hidden, hidden), uniform(-1/sqrt(out), ...)
        params[f"conv{i}_w"] = uni(
            next(ki), (K, 2 * hidden, hidden), 1.0 / math.sqrt(hidden)
        )
    return params


def glind_forward(x, edge_index, params, num_layers):
    """GLIND.forward(x, adj, training=False): dropout is identity at inference.

    Node count is zero-padded to a multiple of 256 and hidden / class dims to a
    multiple of 128 so every Pallas block is lane/sublane aligned; zero padding
    contributes nothing, the result is sliced back at the end.
    """
    n_nodes, d_in = x.shape
    hidden = params["fc0_w"].shape[1]
    n_classes = params["fc1_w"].shape[1]

    n_pad = _round_up(max(n_nodes, 256), 256)
    h_pad = _round_up(hidden, 128)
    c_pad = _round_up(n_classes, 128)

    xp = jnp.pad(x, ((0, n_pad - n_nodes), (0, 0)))
    a_norm = build_gcn_adj(edge_index, n_nodes, n_pad)

    fc0_w = jnp.pad(params["fc0_w"], ((0, 0), (0, h_pad - hidden)))
    fc0_b = jnp.pad(params["fc0_b"], (0, h_pad - hidden))
    fc1_w = jnp.pad(params["fc1_w"], ((0, h_pad - hidden), (0, c_pad - n_classes)))
    fc1_b = jnp.pad(params["fc1_b"], (0, c_pad - n_classes))

    # z = relu(fcs[0](x))
    z = linear(xp, fc0_w, fc0_b, activation="relu")
    for i in range(num_layers):
        # h = softmax(context_enc[i](z)); z = relu(convs[i](z, adj, h))  — fused
        z = glind_conv(a_norm, z, params[f"ctx{i}_w"], params[f"ctx{i}_b"],
                       params[f"conv{i}_w"])
    # out = fcs[-1](z)  (output padded to 128 lanes for an unmasked store)
    out = linear(z, fc1_w, fc1_b, activation=None)
    return out[:n_nodes, :n_classes]
    # TODO(synk): fuse fcs[-1] into the final glind_conv epilogue (z already resident
    # in VMEM at the last k step) to remove one HBM round trip of z.
    # TODO(synk): training path (gumbel-softmax sampling, erdos_renyi random subgraph,
    # reg_loss) is host-side stochastic control flow, not kernelized.


# ----------------------------------------------------------------------------
if __name__ == "__main__":
    N = 16          # nodes
    D_IN = 8        # raw feature dim d
    HIDDEN = 32     # args.hidden_channels
    K = 4           # args.K
    NUM_LAYERS = 2  # args.num_layers
    N_CLASSES = 4   # c
    E = 48          # number of directed edges

    key = jax.random.PRNGKey(0)
    kx, ke1, ke2, kp = jax.random.split(key, 4)

    x = jax.random.normal(kx, (N, D_IN), jnp.float32)
    row = jax.random.randint(ke1, (E,), 0, N)
    col = jax.random.randint(ke2, (E,), 0, N)
    edge_index = jnp.stack([row, col], axis=0)  # [2, E]

    params = init_params(kp, D_IN, HIDDEN, N_CLASSES, K, NUM_LAYERS)

    out = glind_forward(x, edge_index, params, NUM_LAYERS)
    out = jax.block_until_ready(out)
    assert out.shape == (N, N_CLASSES)
    print("KERNEL_OK")
</pallas_src>

<mosaic_0001>
module attributes {stable_mosaic.version = 11 : i64} {
  func.func @_linear_kernel(%arg0: i32, %arg1: memref<128x8xf32, #tpu.memory_space<vmem>>, %arg2: memref<8x128xf32, #tpu.memory_space<vmem>>, %arg3: memref<1x128xf32, #tpu.memory_space<vmem>>, %arg4: memref<128x128xf32, #tpu.memory_space<vmem>>) attributes {dimension_semantics = [#tpu.dimension_semantics<parallel>], iteration_bounds = array<i64: 2>, scalar_prefetch = 0 : i64, scratch_operands = 0 : i64, tpu.core_type = #tpu.core_type<tc>, window_params = [{transform_indices = @transform_0, window_bounds = array<i64: 128, 8>}, {pipeline_mode = #tpu.pipeline_mode<synchronous>, transform_indices = @transform_1, window_bounds = array<i64: 8, 128>}, {pipeline_mode = #tpu.pipeline_mode<synchronous>, transform_indices = @transform_2, window_bounds = array<i64: 1, 128>}, {transform_indices = @transform_3, window_bounds = array<i64: 128, 128>}]} {
    %c0 = arith.constant 0 : index
    %c0_0 = arith.constant 0 : index
    %0 = vector.load %arg1[%c0, %c0_0] : memref<128x8xf32, #tpu.memory_space<vmem>>, vector<128x8xf32>
    %c0_1 = arith.constant 0 : index
    %c0_2 = arith.constant 0 : index
    %1 = vector.load %arg2[%c0_1, %c0_2] : memref<8x128xf32, #tpu.memory_space<vmem>>, vector<8x128xf32>
    %cst = arith.constant dense<0.000000e+00> : vector<128x128xf32>
    %2 = tpu.matmul %0, %1, %cst {dimension_numbers = #tpu.dot_dimension_numbers<[1], [0], [0], [1], [0, 0, 1, 1], [], []>} : vector<128x8xf32>, vector<8x128xf32>, vector<128x128xf32> -> vector<128x128xf32>
    %c0_3 = arith.constant 0 : index
    %c0_4 = arith.constant 0 : index
    %3 = vector.load %arg3[%c0_3, %c0_4] : memref<1x128xf32, #tpu.memory_space<vmem>>, vector<1x128xf32>
    %4 = vector.broadcast %3 : vector<1x128xf32> to vector<128x128xf32>
    %5 = arith.addf %2, %4 : vector<128x128xf32>
    %cst_5 = arith.constant 0.000000e+00 : f32
    %6 = vector.broadcast %cst_5 : f32 to vector<128x128xf32>
    %7 = arith.maximumf %5, %6 : vector<128x128xf32>
    %c0_6 = arith.constant 0 : index
    %c0_7 = arith.constant 0 : index
    %8 = vector.load %arg4[%c0_6, %c0_7] : memref<128x128xf32, #tpu.memory_space<vmem>>, vector<128x128xf32>
    tpu.vector_store %arg4[%c0_6, %c0_7], %7 {strides = array<i32>} : memref<128x128xf32, #tpu.memory_space<vmem>>, vector<128x128xf32>,
    return
  }
  func.func @transform_0(%arg0: i32) -> (i32, i32) {
    %c0_i32 = arith.constant 0 : i32
    %c0_i32_0 = arith.constant 0 : i32
    return %arg0, %c0_i32 : i32, i32
  }
  func.func @transform_1(%arg0: i32) -> (i32, i32) {
    %c0_i32 = arith.constant 0 : i32
    %c0_i32_0 = arith.constant 0 : i32
    %c0_i32_1 = arith.constant 0 : i32
    return %c0_i32, %c0_i32_0 : i32, i32
  }
  func.func @transform_2(%arg0: i32) -> (i32, i32) {
    %c0_i32 = arith.constant 0 : i32
    %c0_i32_0 = arith.constant 0 : i32
    %c0_i32_1 = arith.constant 0 : i32
    return %c0_i32, %c0_i32_0 : i32, i32
  }
  func.func @transform_3(%arg0: i32) -> (i32, i32) {
    %c0_i32 = arith.constant 0 : i32
    %c0_i32_0 = arith.constant 0 : i32
    return %arg0, %c0_i32 : i32, i32
  }
}

</mosaic_0001>

<bundles_post_ra>
// kernel: tpu_custom_call.1
= control target key start
LH: loop header
LB: loop body
LE: loop exit
PB: predicated region body
PF: predicated region fallthrough
CT: control target
= control target key end

     0   :  { %8 = vsyncpa [#allocation3], 0  ;;  %s845_s0 = inlined_call_operand.vmem [shape: f32[256,8], index: 0, kind: input, shape index: {}]   ;;  %s846_s1 = inlined_call_operand.vmem [shape: f32[8,128], index: 1, kind: input, shape index: {}]   ;;  %s847_s2 = inlined_call_operand.vmem [shape: f32[1,128], index: 2, kind: input, shape index: {}]   ;;  %s848_s3 = inlined_call_operand.hbm [shape: f32[256,128], index: 3, kind: output, shape index: {}]  }
   0x1   :  { %10 = vsyncpa [#allocation3 + $0x1], 0  ;;  %s699_s12 = smov 0   ;;  %s701_s13 = smov 0  }
   0x2   :  { %s703_s14 = smov 0   ;;  %s705_s15 = smov 0  }
   0x3 LB: > { %s720_s16 = sadd.s32 4294967295, %s674_s15   ;;  %s498_s17 = sadd.s32 4294967294, %s674_s15   ;;  %s674_s15 = sphi %s705_s15, %s854_s15   ;;  %s670_s14 = sphi %s703_s14, %s853_s14   ;;  %s666_s13 = sphi %s701_s13, %s852_s13   ;;  %s662_s12 = sphi %s699_s12, %s851_s12  }
   0x4   : > { %s724_s18 = sadd.s32 1, %s674_s15   ;;  %s91_s19 = sadd.s32 1, %s670_s14 }
   0x5   : > { %s88_s20 = ssub.s32 %s674_s15, %s724_s18  ;;  %p101_p0 = scmp.ne.s32.totalorder %s670_s14, %s666_s13 }
   0x6   : > { %p89_p1 = scmp.eq.s32.totalorder %s88_s20, 0  ;;  %p102_p2 = scmp.eq.s32.totalorder %s720_s16, 1 }
   0x7   : > { %p107_p3 = scmp.ne.s32.totalorder %s666_s13, %s662_s12  ;;  %p108_p4 = scmp.eq.s32.totalorder %s498_s17, 1 }
   0x8   : > { %s735_s21 = scalar_select %p89_p1, %s670_s14, %s91_s19  }
   0x9   : > { %p737_p5 = por %p102_p2, %p101_p0  ;;  %p741_p6 = por %p108_p4, %p107_p3 }
   0xa   : > { %p501_p7 = scmp.ge.s32.totalorder %s674_s15, 1  ;;  %p141_p8 = scmp.lt.s32.totalorder %s674_s15, 3 }
   0xc   : > { %p142_p9 = pnand %p501_p7, %p141_p8 }
   0xd   : > { %s503_s26 = sshll.u32 (!%p142_p9), %s720_s16, 4  ;;  %s162_s4 = sand.u32 (!%p142_p9), 1, %s666_s13  }
   0xe   : > { %145 = sbr.rel (%p142_p9) target bundleno = 250 (0xfa), region = 32  ;;  %p166_p10 = scmp.lt.s32.totalorder (!%p142_p9), %s503_s26, 31 }
   0xf   : > { %s502_s7 = sshll.u32 (!%p142_p9), %s162_s4, 7  ;;  %s527_s9 = sshll.u32 (!%p142_p9), %s720_s16, 11 }
  0x10   : > { %s776_s8 = scalar_lea.vmem (!%p142_p9), [#allocation2], %s502_s7  ;;  %s795_s19 = scalar_lea.hbm (!%p142_p9), %s848_s3, %s527_s9 }
  0x11   : > { %s436_s10 = sshll.u32 (!%p142_p9), %s776_s8, 4  ;;  %s805_s16 = scalar_lea.sflag (!%p142_p9), [#allocation3], %s162_s4  ;;  %s797_s10 = int_to_ptr.vmem [resolvable:$true] %s436_s10 }
  0x12   : > { %s614_s20 = scalar_lea.vmem (!%p142_p9), %s797_s10, 2048  ;;  %s676_s24 = smov (!%p142_p9), [#allocation2]  }
  0x13   : > { %v188_v0 = vld [vmem:[%s846_s1] sm:$0xff]  ;;  %s856_s26 = smov (!%p166_p10, %s503_s26), 31  ;;  %vm196_vm0 = vcmask 64512   ;;  %p615_p11 = scmp.ne.s32.totalorder %s797_s10, %s614_s20 }
  0x14   : > { %545 = vmatprep.subr.mxu0 %v188_v0  ;;  %571 = vmatprep.subr.mxu1 %v188_v0  ;;  %s504_s27 = sshll.u32 %s856_s26, 3  ;;  %v505_v17 = vld [vmem:[%s847_s2] ss:$0 sm:$0xff]  ;;  %s618_s25 = sshll.u32 %s676_s24, 4  ;;  %s619_s25 = int_to_ptr.vmem [resolvable:$false] %s618_s25 }
  0x15   : > { %546 = vmatpush3.msra.mxu0 %v188_v0  ;;  %572 = vmatpush3.msra.mxu1 %v188_v0  ;;  %s169_s30 = scalar_lea.vmem %s845_s0, %s504_s27  ;;  %p616_p12 = pnand %p615_p11, %p737_p5 }
  0x16   : > { %v172_v1 = vld [vmem:[%s169_s30] sm:$0xff]  ;;  %v173_v3 = vld [vmem:[%s169_s30 + $0x8] sm:$0xff]  ;;  %v174_v5 = vld [vmem:[%s169_s30 + $0x10] sm:$0xff]  ;;  %s620_s26 = scalar_lea.vmem %s619_s25, 4096  ;;  %p621_p0 = scmp.lt.s32.totalorder %s797_s10, %s619_s25 }
  0x17   : > { %v180_v2 = vld [vmem:[%s169_s30 + $0x40] sm:$0xff]  ;;  %547 = vmatprep.mubr.msk.f32.mxu0 %vm196_vm0, %v172_v1  ;;  %v181_v4 = vld [vmem:[%s169_s30 + $0x48] sm:$0xff]  ;;  %v182_v6 = vld [vmem:[%s169_s30 + $0x50] sm:$0xff]  ;;  %p617_p13 = pneg %p616_p12  ;;  %p622_p1 = scmp.lt.s32.totalorder %s620_s26, %s614_s20 }
  0x18   : > { %559 = vmatprep.mubr.msk.f32.mxu1 %vm196_vm0, %v180_v2  ;;  %548 = vmatmul.mubr.msk.f32.vlgmr.msra.gmra.mxu0 %vm196_vm0, %v173_v3  ;;  %v175_v7 = vld [vmem:[%s169_s30 + $0x18] sm:$0xff]  ;;  %v176_v9 = vld [vmem:[%s169_s30 + $0x20] sm:$0xff]  ;;  %v177_v11 = vld [vmem:[%s169_s30 + $0x28] sm:$0xff] }
  0x19   : > { %560 = vmatmul.mubr.msk.f32.vlgmr.msra.gmra.mxu1 %vm196_vm0, %v181_v4  ;;  %550 = vmatprep.mubr.msk.f32.mxu0 %vm196_vm0, %v174_v5  ;;  %v183_v8 = vld [vmem:[%s169_s30 + $0x58] sm:$0xff]  ;;  %v184_v10 = vld [vmem:[%s169_s30 + $0x60] sm:$0xff]  ;;  %v185_v12 = vld [vmem:[%s169_s30 + $0x68] sm:$0xff]  ;;  %p623_p2 = por %p622_p1, %p621_p0 }
  0x1a   : > { %562 = vmatprep.mubr.msk.f32.mxu1 %vm196_vm0, %v182_v6  ;;  %v178_v13 = vld [vmem:[%s169_s30 + $0x30] sm:$0xff]  ;;  %v179_v15 = vld [vmem:[%s169_s30 + $0x38] sm:$0xff] }
  0x1b   : > { %v186_v14 = vld [vmem:[%s169_s30 + $0x70] sm:$0xff]  ;;  %v187_v16 = vld [vmem:[%s169_s30 + $0x78] sm:$0xff]  ;;  %p624_p3 = pnand %p623_p2, %p617_p13 }
  0x1c   : > { %551 = vmatmul.mubr.msk.f32.gmra.mxu0 %vm196_vm0, %v175_v7 }
  0x1d   : > { %563 = vmatmul.mubr.msk.f32.gmra.mxu1 %vm196_vm0, %v183_v8  ;;  %553 = vmatprep.mubr.msk.f32.mxu0 %vm196_vm0, %v176_v9 }
  0x1e   : > { %565 = vmatprep.mubr.msk.f32.mxu1 %vm196_vm0, %v184_v10 }
  0x20   : > { %554 = vmatmul.mubr.msk.f32.gmra.mxu0 %vm196_vm0, %v177_v11 }
  0x21   : > { %566 = vmatmul.mubr.msk.f32.gmra.mxu1 %vm196_vm0, %v185_v12  ;;  %556 = vmatprep.mubr.msk.f32.mxu0 %vm196_vm0, %v178_v13 }
  0x22   : > { %568 = vmatprep.mubr.msk.f32.mxu1 %vm196_vm0, %v186_v14 }
  0x24   : > { %557 = vmatmul.mubr.msk.f32.gmra.mxu0 %vm196_vm0, %v179_v15 }
  0x25   : > { %569 = vmatmul.mubr.msk.f32.gmra.mxu1 %vm196_vm0, %v187_v16 }
  0xd8   : > { %v549_v18 = vpop.f32.mrf.mxu0 }
  0xd9   : > { %v561_v19 = vpop.f32.mrf.mxu1  ;;  %v317_v20 = vadd.f32 %v549_v18, %v505_v17 }
  0xda   : > { %v357_v21 = vadd.f32 %v561_v19, %v505_v17  ;;  %v311_v22 = vpop.f32.mrf.mxu0 }
  0xdb   : > { %v351_v23 = vpop.f32.mrf.mxu1  ;;  %v391_v24 = vmax.f32 %v317_v20, 0.0  ;;  %v312_v26 = vadd.f32 %v505_v17, %v311_v22 }
  0xdc   : > { %v399_v25 = vmax.f32 %v357_v21, 0.0  ;;  %v352_v27 = vadd.f32 %v505_v17, %v351_v23  ;;  %v552_v28 = vpop.f32.mrf.mxu0 }
  0xdd   : > { %v564_v29 = vpop.f32.mrf.mxu1  ;;  %407 = vst [vmem:[%s776_s8 + $0x8] sm:$0xff] %v391_v24  ;;  %v390_v30 = vmax.f32 %v312_v26, 0.0  ;;  %v327_v32 = vadd.f32 %v552_v28, %v505_v17 }
  0xde   : > { %415 = vst [vmem:[%s776_s8 + $0x48] sm:$0xff] %v399_v25  ;;  %v398_v31 = vmax.f32 %v352_v27, 0.0  ;;  %v367_v33 = vadd.f32 %v564_v29, %v505_v17  ;;  %v321_v34 = vpop.f32.mrf.mxu0 }
  0xdf   : > { %v361_v35 = vpop.f32.mrf.mxu1  ;;  %406 = vst [vmem:[%s776_s8] sm:$0xff] %v390_v30  ;;  %v393_v36 = vmax.f32 %v327_v32, 0.0  ;;  %v322_v38 = vadd.f32 %v505_v17, %v321_v34 }
  0xe0   : > { %414 = vst [vmem:[%s776_s8 + $0x40] sm:$0xff] %v398_v31  ;;  %v401_v37 = vmax.f32 %v367_v33, 0.0  ;;  %v362_v39 = vadd.f32 %v505_v17, %v361_v35  ;;  %v555_v40 = vpop.f32.mrf.mxu0 }
  0xe1   : > { %v567_v41 = vpop.f32.mrf.mxu1  ;;  %409 = vst [vmem:[%s776_s8 + $0x18] sm:$0xff] %v393_v36  ;;  %v392_v42 = vmax.f32 %v322_v38, 0.0  ;;  %v337_v44 = vadd.f32 %v555_v40, %v505_v17 }
  0xe2   : > { %417 = vst [vmem:[%s776_s8 + $0x58] sm:$0xff] %v401_v37  ;;  %v400_v43 = vmax.f32 %v362_v39, 0.0  ;;  %v377_v45 = vadd.f32 %v567_v41, %v505_v17  ;;  %v331_v46 = vpop.f32.mrf.mxu0 }
  0xe3   : > { %v371_v47 = vpop.f32.mrf.mxu1  ;;  %408 = vst [vmem:[%s776_s8 + $0x10] sm:$0xff] %v392_v42  ;;  %v395_v48 = vmax.f32 %v337_v44, 0.0  ;;  %v332_v50 = vadd.f32 %v505_v17, %v331_v46 }
  0xe4   : > { %416 = vst [vmem:[%s776_s8 + $0x50] sm:$0xff] %v400_v43  ;;  %v403_v49 = vmax.f32 %v377_v45, 0.0  ;;  %v372_v51 = vadd.f32 %v505_v17, %v371_v47  ;;  %v558_v52 = vpop.f32.mrf.mxu0 }
  0xe5   : > { %v570_v53 = vpop.f32.mrf.mxu1  ;;  %411 = vst [vmem:[%s776_s8 + $0x28] sm:$0xff] %v395_v48  ;;  %v394_v54 = vmax.f32 %v332_v50, 0.0  ;;  %v347_v56 = vadd.f32 %v558_v52, %v505_v17 }
  0xe6   : > { %419 = vst [vmem:[%s776_s8 + $0x68] sm:$0xff] %v403_v49  ;;  %v402_v55 = vmax.f32 %v372_v51, 0.0  ;;  %v387_v57 = vadd.f32 %v570_v53, %v505_v17  ;;  %v341_v58 = vpop.f32.mrf.mxu0 }
  0xe7   : > { %v381_v59 = vpop.f32.mrf.mxu1  ;;  %410 = vst [vmem:[%s776_s8 + $0x20] sm:$0xff] %v394_v54  ;;  %v397_v60 = vmax.f32 %v347_v56, 0.0  ;;  %v342_v62 = vadd.f32 %v505_v17, %v341_v58 }
  0xe8   : > { %418 = vst [vmem:[%s776_s8 + $0x60] sm:$0xff] %v402_v55  ;;  %v405_v61 = vmax.f32 %v387_v57, 0.0  ;;  %v382_v63 = vadd.f32 %v505_v17, %v381_v59 }
  0xe9   : > { %413 = vst [vmem:[%s776_s8 + $0x38] sm:$0xff] %v397_v60  ;;  %v396_v0 = vmax.f32 %v342_v62, 0.0 }
  0xea   : > { %421 = vst [vmem:[%s776_s8 + $0x78] sm:$0xff] %v405_v61  ;;  %v404_v1 = vmax.f32 %v382_v63, 0.0 }
  0xeb   : > { %412 = vst [vmem:[%s776_s8 + $0x30] sm:$0xff] %v396_v0 }
  0xec   : > { %420 = vst [vmem:[%s776_s8 + $0x70] sm:$0xff] %v404_v1 }
  0xed   : > { %627 = shalt.err (!%p624_p3)
}
  0xee   : > { %s628_s27 = scalar_lea.hbm %s795_s19, 2048  ;;  %s632_s30 = scalar_lea.hbm %s848_s3, 4096 }
  0xef   : > { %p629_p4 = scmp.ne.s32.totalorder %s795_s19, %s628_s27  ;;  %p633_p9 = scmp.lt.s32.totalorder %s795_s19, %s848_s3 }
  0xf0   : > { %p634_p10 = scmp.lt.s32.totalorder %s632_s30, %s628_s27 }
  0xf1   : > { %p630_p7 = pnand %p629_p4, %p737_p5 }
  0xf2   : > { %p635_p11 = por %p634_p10, %p633_p9 }
  0xf3   : > { %p631_p8 = pneg %p630_p7 }
  0xf5   : > { %p636_p12 = pnand %p635_p11, %p631_p8 }
  0xf7   : > { %639 = shalt.err (!%p636_p12)
}
  0xf8   : > { %s677_s6 = smov 128   ;;  %s678_s7 = smov 8  }
  0xf9   : > { %573 = dma.vmem_to_hbm [thread:$0]  (%p737_p5), %s797_s10, 2048, %s795_s19, %s805_s16, %s677_s6, %s677_s6, %s678_s7  }
  0xfa PF: > { %p579_p13 = scmp.ge.s32.totalorder %s674_s15, 2  ;;  %s451_s8 = sand.u32 1, %s662_s12  }
  0xfb   : > { %s452_s9 = scalar_lea.sflag [#allocation3], %s451_s8 }
  0xfc   : > { %p576_p0 = pnand %p579_p13, %p741_p6 }
  0xfe   : > { %p577_p1 = pneg %p576_p0 }
 0x100   : > { %657 = dma.done.wait (%p577_p1), %s452_s9, 2048  }
 0x101   : > { %659 = vsyncadd (%p577_p1), %s452_s9, 4294965248  ;;  %p13_p2 = scmp.ge.s32.totalorder %s724_s18, 4   ;;  %s851_s12 = smov %s666_s13 }
 0x102   : > { %s852_s13 = smov %s670_s14  ;;  %s853_s14 = smov %s735_s21 }
 0x103   : > { %s854_s15 = smov %s724_s18  ;;  %15 = sbr.rel (!%p13_p2) target bundleno = 3 (0x3), region = 67 }
 0x108   :  { %457 = vsyncpa [#allocation3], 1 }
 0x109   :  { %459 = vsyncpa [#allocation3 + $0x1], 1 }

</bundles_post_ra>
